<compile_context>
chip_gen: v6e
topology: v6e:2x2x1
jax: 0.10.0
libtpu: 0.0.40
codegen_flags: <defaults>
</compile_context>

<pallas_src>
import jax
import jax.numpy as jnp
from jax.experimental import pallas as pl
from jax.experimental.pallas import tpu as pltpu

BN_EPS = 1e-5
_VMEM_LIMIT_BYTES = 48 * 1024 * 1024   # fits v7x (64 MiB) and v5e/v6e (128 MiB)
_TILE_BUDGET_BYTES = 16 * 1024 * 1024  # double-buffered tiles + weight must fit


def _input_stats_kernel(x_ref, gram_ref, s_ref):
    # x_ref:    (Cin, TN)   one (batch, N-tile) slab of the NCW input
    # gram_ref: (Cin, Cin)  per-batch resident accumulator of sum(x x^T)
    # s_ref:    (Cin, 1)    per-batch resident accumulator of sum(x)
    @pl.when(pl.program_id(1) == 0)
    def _():
        gram_ref[...] = jnp.zeros_like(gram_ref)
        s_ref[...] = jnp.zeros_like(s_ref)

    x = x_ref[...]                                   # native dtype into the MXU
    ones = jnp.ones((x.shape[1], 1), dtype=x.dtype)
    # x @ x^T expressed as dot_general (contract axis 1 with axis 1): no
    # explicit transpose, MXU with large K = TN, f32 accumulation.
    gram_ref[...] += jax.lax.dot_general(
        x, x, (((1,), (1,)), ((), ())), preferred_element_type=jnp.float32)
    # Row sums via MXU matmul-with-ones (keeps XLU/VALU slots free).
    s_ref[...] += jnp.dot(x, ones, preferred_element_type=jnp.float32)


def _folded_matmul_relu_kernel(x_ref, w_ref, shift_ref, o_ref):
    # out = max(W' @ x + shift, 0), W' = BN-scale-folded conv weight.
    y = jnp.dot(w_ref[...], x_ref[...], preferred_element_type=jnp.float32)
    o_ref[...] = jnp.maximum(y + shift_ref[...], 0.0).astype(o_ref.dtype)


def _choose_tile_n(n_pad, cin, cout, itemsize):
    """Largest lane-dense N-tile whose double-buffered x/out tiles (plus the
    double-buffered folded weight) fit the tile budget on all generations."""
    fixed = 2 * cout * cin * itemsize + 2 * cout * 4     # dbl-buffered W' + shift
    per_col = 2 * (cin + cout) * itemsize                # dbl-buffered x + out cols
    for tn in (2048, 1024, 512, 256, 128):
        if n_pad % tn == 0 and fixed + per_col * tn <= _TILE_BUDGET_BYTES:
            return tn
    # Small N (or N < 128): single full-extent block (equal-to-full-dim is legal).
    return n_pad


def fc_bn_relu_1d(x_bcn, weight, gamma, beta):
    """FCBNReLU1D.forward (training-mode BatchNorm batch stats, biased var).

    x_bcn:  (B, Cin, N)   PyTorch NCW layout.
    weight: (Cout, Cin, 1) Conv1d(k=1, groups=1, bias=False) weight.
    gamma/beta: (Cout,)   BatchNorm1d affine parameters.
    Returns (B, Cout, N) in x_bcn.dtype.
    """
    B, Cin, N = x_bcn.shape
    Cout = weight.shape[0]
    w = weight[:, :, 0].astype(jnp.float32)              # (Cout, Cin)

    # Pad N up to a multiple of 128 when large and unaligned.  Zero columns
    # contribute nothing to G or s (stats stay exact); padded outputs sliced off.
    if N >= 128 and N % 128 != 0:
        n_pad = ((N + 127) // 128) * 128
        x_work = jnp.pad(x_bcn, ((0, 0), (0, 0), (0, n_pad - N)))
    else:
        n_pad = N
        x_work = x_bcn

    itemsize = jnp.dtype(x_work.dtype).itemsize
    tn = _choose_tile_n(n_pad, Cin, Cout, itemsize)
    grid = (B, n_pad // tn)

    # ---- Pass 1: per-batch input Gram stats (no y round-trip) ---------------
    stats_cost = pl.CostEstimate(
        flops=2 * B * n_pad * Cin * (Cin + 1),
        transcendentals=0,
        bytes_accessed=B * Cin * n_pad * itemsize + B * (Cin * Cin + Cin) * 4)
    gram_b, s_b = pl.pallas_call(
        _input_stats_kernel,
        out_shape=(
            jax.ShapeDtypeStruct((B, Cin, Cin), jnp.float32),
            jax.ShapeDtypeStruct((B, Cin, 1), jnp.float32),
        ),
        grid=grid,
        in_specs=[pl.BlockSpec((None, Cin, tn), lambda b, t: (b, 0, t))],
        out_specs=(
            pl.BlockSpec((None, Cin, Cin), lambda b, t: (b, 0, 0)),
            pl.BlockSpec((None, Cin, 1), lambda b, t: (b, 0, 0)),
        ),
        compiler_params=pltpu.CompilerParams(
            # per-batch resident accumulators -> batch axis shards across
            # TensorCores (v7x megacore); the N-tile axis is the reduction.
            dimension_semantics=("parallel", "arbitrary"),
            vmem_limit_bytes=_VMEM_LIMIT_BYTES),
        cost_estimate=stats_cost,
    )(x_work)

    # ---- Tiny JAX epilogue: BN stats of y = W @ x, folded into W'/shift -----
    gram = jnp.sum(gram_b, axis=0)                        # (Cin, Cin)
    s = jnp.sum(s_b, axis=0)[:, 0]                        # (Cin,)
    count = jnp.float32(B * N)                            # true element count
    csum = w @ s                                          # (Cout,)  = sum_m y
    csumsq = jnp.sum((w @ gram) * w, axis=1)              # (Cout,)  = sum_m y^2
    mean = csum / count
    # Biased variance via E[y^2] - mean^2; max() guards tiny negatives from f32
    # cancellation.
    # TODO(synk): for very large B*N with |mean| >> std, a shifted/Welford
    # accumulation would be more accurate than this one-pass form.
    var = jnp.maximum(csumsq / count - mean * mean, 0.0)
    inv_std = jax.lax.rsqrt(var + BN_EPS)
    scale = gamma.astype(jnp.float32) * inv_std           # (Cout,)
    shift = (beta.astype(jnp.float32) - mean * scale).reshape(Cout, 1)
    w_fold = (scale[:, None] * w).astype(x_work.dtype)    # (Cout, Cin)

    # ---- Pass 2: folded matmul + bias + ReLU (fully parallel) ---------------
    mm_cost = pl.CostEstimate(
        flops=2 * B * n_pad * Cout * Cin,
        transcendentals=0,
        bytes_accessed=(B * Cin * n_pad * itemsize
                        + B * Cout * n_pad * itemsize
                        + Cout * Cin * jnp.dtype(w_fold.dtype).itemsize
                        + Cout * 4))
    out = pl.pallas_call(
        _folded_matmul_relu_kernel,
        out_shape=jax.ShapeDtypeStruct((B, Cout, n_pad), x_bcn.dtype),
        grid=grid,
        in_specs=[
            pl.BlockSpec((None, Cin, tn), lambda b, t: (b, 0, t)),
            pl.BlockSpec((Cout, Cin), lambda b, t: (0, 0)),
            pl.BlockSpec((Cout, 1), lambda b, t: (0, 0)),
        ],
        out_specs=pl.BlockSpec((None, Cout, tn), lambda b, t: (b, 0, t)),
        compiler_params=pltpu.CompilerParams(
            dimension_semantics=("parallel", "parallel"),
            vmem_limit_bytes=_VMEM_LIMIT_BYTES),
        cost_estimate=mm_cost,
    )(x_work, w_fold, shift)

    if n_pad != N:
        out = out[:, :, :N]
    return out


if __name__ == "__main__":
    key = jax.random.PRNGKey(0)
    k_x, k_w, k_g, k_b = jax.random.split(key, 4)

    B, Cin, Cout, N = 2, 4, 8, 16

    x = jax.random.normal(k_x, (B, Cin, N), dtype=jnp.float32)
    weight = jax.random.normal(k_w, (Cout, Cin, 1), dtype=jnp.float32) * 0.1
    gamma = 1.0 + 0.1 * jax.random.normal(k_g, (Cout,), dtype=jnp.float32)
    beta = 0.1 * jax.random.normal(k_b, (Cout,), dtype=jnp.float32)

    out = fc_bn_relu_1d(x, weight, gamma, beta)
    jax.block_until_ready(out)

    # Pure-JAX reference (Conv1d k=1 -> BN training-mode biased var -> ReLU).
    w2 = weight[:, :, 0]
    y_ref = jnp.einsum('oc,bcn->bon', w2, x)
    mean = jnp.mean(y_ref, axis=(0, 2), keepdims=True)
    var = jnp.mean((y_ref - mean) ** 2, axis=(0, 2), keepdims=True)
    ref = jnp.maximum(
        gamma[None, :, None] * (y_ref - mean) * jax.lax.rsqrt(var + BN_EPS)
        + beta[None, :, None], 0.0)

    assert out.shape == (B, Cout, N)
    assert bool(jnp.all(jnp.isfinite(out)))
    assert bool(jnp.all(out >= 0.0))
    assert bool(jnp.allclose(out, ref, rtol=1e-4, atol=1e-4)), \
        float(jnp.max(jnp.abs(out - ref)))

    print("KERNEL_OK")
</pallas_src>

<mosaic_0001>
module attributes {stable_mosaic.version = 11 : i64} {
  func.func @_input_stats_kernel(%arg0: i32, %arg1: i32, %arg2: memref<1x4x16xf32, #tpu.memory_space<vmem>>, %arg3: memref<1x4x4xf32, #tpu.memory_space<vmem>>, %arg4: memref<1x4x1xf32, #tpu.memory_space<vmem>>) attributes {dimension_semantics = [#tpu.dimension_semantics<parallel>, #tpu.dimension_semantics<arbitrary>], iteration_bounds = array<i64: 2, 1>, scalar_prefetch = 0 : i64, scratch_operands = 0 : i64, tpu.core_type = #tpu.core_type<tc>, window_params = [{transform_indices = @transform_0, window_bounds = array<i64: 1, 4, 16>}, {transform_indices = @transform_1, window_bounds = array<i64: 1, 4, 4>}, {transform_indices = @transform_2, window_bounds = array<i64: 1, 4, 1>}]} {
    %c0_i32 = arith.constant 0 : i32
    %0 = arith.cmpi eq, %arg1, %c0_i32 : i32
    %1 = arith.extui %0 : i1 to i32
    %c0_i32_0 = arith.constant 0 : i32
    %2 = arith.cmpi ne, %1, %c0_i32_0 : i32
    scf.if %2 {
      %cst_17 = arith.constant 0.000000e+00 : f32
      %20 = vector.broadcast %cst_17 : f32 to vector<4x4xf32>
      %c0_18 = arith.constant 0 : index
      %c0_19 = arith.constant 0 : index
      %c0_20 = arith.constant 0 : index
      %21 = vector.load %arg3[%c0_18, %c0_19, %c0_20] : memref<1x4x4xf32, #tpu.memory_space<vmem>>, vector<1x4x4xf32>
      %22 = vector.shape_cast %21 : vector<1x4x4xf32> to vector<4x4xf32>
      %23 = vector.shape_cast %20 : vector<4x4xf32> to vector<1x4x4xf32>
      tpu.vector_store %arg3[%c0_18, %c0_19, %c0_20], %23 {strides = array<i32>} : memref<1x4x4xf32, #tpu.memory_space<vmem>>, vector<1x4x4xf32>,
      %cst_21 = arith.constant 0.000000e+00 : f32
      %24 = vector.broadcast %cst_21 : f32 to vector<4x1xf32>
      %c0_22 = arith.constant 0 : index
      %c0_23 = arith.constant 0 : index
      %c0_24 = arith.constant 0 : index
      %25 = vector.load %arg4[%c0_22, %c0_23, %c0_24] : memref<1x4x1xf32, #tpu.memory_space<vmem>>, vector<1x4x1xf32>
      %26 = vector.shape_cast %25 : vector<1x4x1xf32> to vector<4x1xf32>
      %27 = vector.shape_cast %24 : vector<4x1xf32> to vector<1x4x1xf32>
      tpu.vector_store %arg4[%c0_22, %c0_23, %c0_24], %27 {strides = array<i32>} : memref<1x4x1xf32, #tpu.memory_space<vmem>>, vector<1x4x1xf32>,
    } else {
    }
    %c0 = arith.constant 0 : index
    %c0_1 = arith.constant 0 : index
    %c0_2 = arith.constant 0 : index
    %3 = vector.load %arg2[%c0, %c0_1, %c0_2] : memref<1x4x16xf32, #tpu.memory_space<vmem>>, vector<1x4x16xf32>
    %4 = vector.shape_cast %3 : vector<1x4x16xf32> to vector<4x16xf32>
    %cst = arith.constant 1.000000e+00 : f32
    %5 = vector.broadcast %cst : f32 to vector<16x1xf32>
    %c0_3 = arith.constant 0 : index
    %c0_4 = arith.constant 0 : index
    %c0_5 = arith.constant 0 : index
    %6 = vector.load %arg3[%c0_3, %c0_4, %c0_5] : memref<1x4x4xf32, #tpu.memory_space<vmem>>, vector<1x4x4xf32>
    %7 = vector.shape_cast %6 : vector<1x4x4xf32> to vector<4x4xf32>
    %cst_6 = arith.constant dense<0.000000e+00> : vector<4x4xf32>
    %8 = tpu.matmul %4, %4, %cst_6 {dimension_numbers = #tpu.dot_dimension_numbers<[1], [1], [0], [0], [0, 0, 1, 0], [], []>} : vector<4x16xf32>, vector<4x16xf32>, vector<4x4xf32> -> vector<4x4xf32>
    %9 = arith.addf %7, %8 : vector<4x4xf32>
    %c0_7 = arith.constant 0 : index
    %c0_8 = arith.constant 0 : index
    %c0_9 = arith.constant 0 : index
    %10 = vector.load %arg3[%c0_7, %c0_8, %c0_9] : memref<1x4x4xf32, #tpu.memory_space<vmem>>, vector<1x4x4xf32>
    %11 = vector.shape_cast %10 : vector<1x4x4xf32> to vector<4x4xf32>
    %12 = vector.shape_cast %9 : vector<4x4xf32> to vector<1x4x4xf32>
    tpu.vector_store %arg3[%c0_7, %c0_8, %c0_9], %12 {strides = array<i32>} : memref<1x4x4xf32, #tpu.memory_space<vmem>>, vector<1x4x4xf32>,
    %c0_10 = arith.constant 0 : index
    %c0_11 = arith.constant 0 : index
    %c0_12 = arith.constant 0 : index
    %13 = vector.load %arg4[%c0_10, %c0_11, %c0_12] : memref<1x4x1xf32, #tpu.memory_space<vmem>>, vector<1x4x1xf32>
    %14 = vector.shape_cast %13 : vector<1x4x1xf32> to vector<4x1xf32>
    %cst_13 = arith.constant dense<0.000000e+00> : vector<4x1xf32>
    %15 = tpu.matmul %4, %5, %cst_13 {dimension_numbers = #tpu.dot_dimension_numbers<[1], [0], [0], [1], [0, 0, 1, 1], [], []>} : vector<4x16xf32>, vector<16x1xf32>, vector<4x1xf32> -> vector<4x1xf32>
    %16 = arith.addf %14, %15 : vector<4x1xf32>
    %c0_14 = arith.constant 0 : index
    %c0_15 = arith.constant 0 : index
    %c0_16 = arith.constant 0 : index
    %17 = vector.load %arg4[%c0_14, %c0_15, %c0_16] : memref<1x4x1xf32, #tpu.memory_space<vmem>>, vector<1x4x1xf32>
    %18 = vector.shape_cast %17 : vector<1x4x1xf32> to vector<4x1xf32>
    %19 = vector.shape_cast %16 : vector<4x1xf32> to vector<1x4x1xf32>
    tpu.vector_store %arg4[%c0_14, %c0_15, %c0_16], %19 {strides = array<i32>} : memref<1x4x1xf32, #tpu.memory_space<vmem>>, vector<1x4x1xf32>,
    return
  }
  func.func @transform_0(%arg0: i32, %arg1: i32) -> (i32, i32, i32) {
    %c0_i32 = arith.constant 0 : i32
    %c0_i32_0 = arith.constant 0 : i32
    return %arg0, %c0_i32, %arg1 : i32, i32, i32
  }
  func.func @transform_1(%arg0: i32, %arg1: i32) -> (i32, i32, i32) {
    %c0_i32 = arith.constant 0 : i32
    %c0_i32_0 = arith.constant 0 : i32
    %c0_i32_1 = arith.constant 0 : i32
    return %arg0, %c0_i32, %c0_i32_0 : i32, i32, i32
  }
  func.func @transform_2(%arg0: i32, %arg1: i32) -> (i32, i32, i32) {
    %c0_i32 = arith.constant 0 : i32
    %c0_i32_0 = arith.constant 0 : i32
    %c0_i32_1 = arith.constant 0 : i32
    return %arg0, %c0_i32, %c0_i32_0 : i32, i32, i32
  }
}

</mosaic_0001>

<bundles_post_ra>
// kernel: tpu_custom_call.1
= control target key start
LH: loop header
LB: loop body
LE: loop exit
PB: predicated region body
PF: predicated region fallthrough
CT: control target
= control target key end

     0   :  { %8 = vsyncpa [#allocation3], 0  ;;  %s848_s0 = inlined_call_operand.hbm [shape: f32[2,4,16], index: 0, kind: input, shape index: {}]   ;;  %s849_s1 = inlined_call_operand.hbm [shape: f32[2,4,4], index: 1, kind: output, shape index: {0}]   ;;  %s850_s2 = inlined_call_operand.vmem [shape: f32[2,4,1], index: 2, kind: output, shape index: {1}]  }
   0x1   :  { %10 = vsyncpa [#allocation3 + $0x1], 0 }
   0x2   :  { %11 = vsyncpa [#allocation4], 0 }
   0x3   :  { %13 = vsyncpa [#allocation4 + $0x1], 0  ;;  %s699_s9 = smov 0   ;;  %s701_s10 = smov 0  }
   0x4   :  { %s703_s11 = smov 0   ;;  %s705_s12 = smov 0  }
   0x5   :  { %s707_s13 = smov 0   ;;  %s709_s14 = smov 0  }
   0x6 LB: > { %s470_s15 = sadd.s32 4294967295, %s677_s14   ;;  %s471_s16 = sadd.s32 4294967294, %s677_s14   ;;  %s677_s14 = sphi %s709_s14, %s19_s14   ;;  %s673_s13 = sphi %s707_s13, %s862_s13   ;;  %s669_s12 = sphi %s705_s12, %s861_s12   ;;  %s665_s11 = sphi %s703_s11, %s860_s11   ;;  %s661_s10 = sphi %s701_s10, %s859_s10   ;;  %s657_s9 = sphi %s699_s9, %s858_s9  }
   0x7   : > { %s31_s17 = sadd.s32 1, %s673_s13  ;;  %s40_s18 = sadd.s32 1, %s665_s11 }
   0x8   : > { %p33_p0 = scmp.ge.s32.totalorder %s31_s17, 2  ;;  %p47_p1 = scmp.ne.s32.totalorder %s665_s11, %s661_s10 }
   0x9   : > { %p48_p2 = scmp.eq.s32.totalorder %s677_s14, 0  ;;  %p53_p3 = scmp.ne.s32.totalorder %s661_s10, %s657_s9 }
   0xa   : > { %s864_s17 = smov (%p33_p0, %s31_s17), 0  ;;  %p54_p5 = scmp.eq.s32.totalorder %s470_s15, 0 }
   0xb   : > { %p740_p4 = por %p48_p2, %p47_p1  ;;  %s35_s20 = ssub.s32 %s673_s13, %s864_s17 }
   0xc   : > { %p77_p6 = scmp.eq.s32.totalorder %s470_s15, 1  ;;  %p38_p7 = scmp.eq.s32.totalorder %s35_s20, 0 }
   0xd   : > { %p746_p8 = por %p54_p5, %p53_p3  ;;  %p83_p10 = scmp.eq.s32.totalorder %s471_s16, 1 }
   0xe   : > { %p750_p9 = por %p77_p6, %p47_p1  ;;  %p516_p13 = scmp.lt.s32.totalorder %s677_s14, 2 }
   0xf   : > { %s755_s23 = scalar_select %p38_p7, %s665_s11, %s40_s18  }
  0x10   : > { %p757_p11 = por %p83_p10, %p53_p3  ;;  %s129_s25 = sand.u32 1, %s665_s11  }
  0x11   : > { %s474_s26 = sshll.u32 %s129_s25, 2  ;;  %s475_s27 = sshll.u32 %s673_s13, 6 }
  0x12   : > { %s854_s24 = scalar_select %p757_p11, 1, 0 }
  0x13   : > { %s139_s30 = scalar_lea.hbm %s848_s0, %s475_s27  ;;  %s133_s3 = scalar_lea.vmem [#allocation2], %s474_s26 }
  0x14   : > { %s141_s4 = sshll.u32 %s133_s3, 4  ;;  %p770_p0 = pnand %p516_p13, %p740_p4  ;;  %s142_s4 = int_to_ptr.vmem [resolvable:$true] %s141_s4 }
  0x15   : > { %p476_p1 = scmp.ge.s32.totalorder %s677_s14, 1  ;;  %p146_p2 = scmp.lt.s32.totalorder %s677_s14, 3 }
  0x16   : > { %s130_s6 = scalar_lea.sflag [#allocation3], %s129_s25  ;;  %p571_p3 = pneg %p770_p0 }
  0x17   : > { %s582_s7 = scalar_lea.vmem %s142_s4, 64  ;;  %s679_s8 = smov [#allocation2]  }
  0x18   : > { %p583_p5 = scmp.ne.s32.totalorder %s142_s4, %s582_s7  ;;  %s587_s15 = sshll.u32 %s679_s8, 4  ;;  %s588_s15 = int_to_ptr.vmem [resolvable:$false] %s587_s15 }
  0x19   : > { %s589_s16 = scalar_lea.vmem %s588_s15, 128  ;;  %p590_p10 = scmp.lt.s32.totalorder %s142_s4, %s588_s15 }
  0x1a   : > { %p585_p6 = pnand %p583_p5, %p571_p3  ;;  %p591_p12 = scmp.lt.s32.totalorder %s589_s16, %s582_s7 }
  0x1c   : > { %p586_p7 = pneg %p585_p6  ;;  %p592_p4 = por %p591_p12, %p590_p10 }
  0x1e   : > { %p593_p13 = pnand %p592_p4, %p586_p7 }
  0x20   : > { %596 = shalt.err (!%p593_p13)
}
  0x21   : > { %511 = dma.hbm_to_vmem [thread:$0]  (!%p770_p0), %s139_s30, 64, %s142_s4, %s130_s6  }
  0x22   : > { %p147_p11 = pnand %p476_p1, %p146_p2 }
  0x23   : > { %s785_s18 = sand.u32 (!%p147_p11), 1, %s661_s10  }
  0x24   : > { %150 = sbr.rel (%p147_p11) target bundleno = 257 (0x101), region = 24  ;;  %s477_s19 = sshll.u32 (!%p147_p11), %s785_s18, 2 }
  0x25   : > { %s153_s20 = scalar_lea.sflag (!%p147_p11), [#allocation3], %s785_s18  ;;  %s156_s25 = scalar_lea.vmem (!%p147_p11), [#allocation2], %s477_s19 }
  0x29   : > { %648 = dma.done.wait (%p746_p8), %s153_s20, 64  }
  0x2a   : > { %650 = vsyncadd (%p746_p8), %s153_s20, 4294967232  ;;  %p181_p12 = scmp.lt.s32.totalorder %s669_s12, 1  ;;  %v680_v0 = vmov 0.0   ;;  %v681_v1 = vmov 1.0   ;;  %vm682_vm0 = vmmov 0   ;;  %vm191_vm1 = vcmask 3072  }
  0x2b   : > { %497 = vmatprep.subr.mxu1 %v680_v0  ;;  %492 = vmatprep.subr.mxu0 %v680_v0  ;;  %vm195_vm2 = vcmask 130048   ;;  %v193_v2 = vld [vmem:[%s156_s25] sm:$0xf]  ;;  %vm189_vm3 = vcmask 27648   ;;  %s174_s30 = scalar_lea.vmem [#allocation5], %s477_s19  ;;  %s484_s3 = sshll.u32 %s669_s12, 6 }
  0x2c   : > { %498 = vmatpush3.msra.mxu1 %v681_v1  ;;  %501 = vmatprep.mubr.msk.f32.mxu1 %vm682_vm0, %v680_v0  ;;  %s182_s26 = scalar_select %p181_p12, %s669_s12, 1  ;;  %190 = vst.msk [vmem:[%s174_s30] sm:$0xf] %vm189_vm3, %v680_v0 }
  0x2d   : > { %499 = vmatprep.subr.mxu1 %v680_v0  ;;  %494 = vmatprep.mubr.msk.f32.mxu0 %vm682_vm0, %v680_v0  ;;  %s364_s4 = sshll.u32 %s174_s30, 4  ;;  %s805_s7 = scalar_lea.hbm %s849_s1, %s484_s3  ;;  %s365_s4 = int_to_ptr.vmem [resolvable:$true] %s364_s4 }
  0x2e   : > { %500 = vmatpush3.msra.mxu1 %v681_v1  ;;  %s479_s27 = sshll.u32 %s182_s26, 2  ;;  %493 = vmatpush3.xpose.msk.msra.mxu0 %vm195_vm2, %v193_v2  ;;  %s347_s8 = scalar_lea.sflag [#allocation4], %s785_s18 }
  0x2f   : > { %s184_s29 = scalar_lea.vmem %s850_s2, %s479_s27  ;;  %502 = vmatmul.mubr.msk.f32.vlgmr.msra.gmra.mxu1 %vm195_vm2, %v193_v2  ;;  %s597_s15 = scalar_lea.vmem %s365_s4, 64 }
  0x30   : > { %192 = vst.msk [vmem:[%s184_s29] sm:$0xf] %vm191_vm1, %v680_v0  ;;  %p598_p8 = scmp.ne.s32.totalorder %s365_s4, %s597_s15  ;;  %s683_s12 = smov [#allocation5]  }
  0x31   : > { %495 = vmatmul.mubr.msk.f32.vlgmr.msra.gmra.mxu0 %vm195_vm2, %v193_v2  ;;  %s601_s16 = sshll.u32 %s683_s12, 4  ;;  %s602_s16 = int_to_ptr.vmem [resolvable:$false] %s601_s16 }
  0x32   : > { %p599_p11 = pnand %p598_p8, %p750_p9  ;;  %s603_s19 = scalar_lea.vmem %s602_s16, 128 }
  0x33   : > { %v194_v6 = vld [vmem:[%s174_s30] sm:$0xf]  ;;  %p604_p1 = scmp.lt.s32.totalorder %s365_s4, %s602_s16  ;;  %p605_p2 = scmp.lt.s32.totalorder %s603_s19, %s597_s15 }
  0x34   : > { %p600_p0 = pneg %p599_p11 }
  0x35   : > { %p606_p3 = por %p605_p2, %p604_p1 }
  0x37   : > { %v272_v3 = vld [vmem:[%s184_s29] sm:$0xf]  ;;  %p607_p5 = pnand %p606_p3, %p600_p0 }
  0xef   : > { %v339_v4 = vpop.f32.mrf.mxu1 }
  0xf0   : > { %v343_v5 = vadd.f32 %v339_v4, %v272_v3 }
  0xf1   : > { %v503_v7 = vpop.f32.mrf.mxu1  ;;  %v265_v8 = vpop.f32.mrf.mxu0 }
  0xf2   : > { %345 = vst.msk [vmem:[%s184_s29] sm:$0xf] %vm191_vm1, %v343_v5  ;;  %v269_v9 = vadd.f32 %v265_v8, %v194_v6 }
  0xf3   : > { %v496_v10 = vpop.f32.mrf.mxu0 }
  0xf4   : > { %271 = vst.msk [vmem:[%s174_s30] sm:$0xf] %vm189_vm3, %v269_v9 }
  0xf5   : > { %610 = shalt.err (!%p607_p5)
}
  0xf6   : > { %s611_s20 = scalar_lea.hbm %s805_s7, 64  ;;  %s615_s26 = scalar_lea.hbm %s849_s1, 128 }
  0xf7   : > { %p612_p6 = scmp.ne.s32.totalorder %s805_s7, %s611_s20  ;;  %p616_p4 = scmp.lt.s32.totalorder %s805_s7, %s849_s1 }
  0xf8   : > { %p617_p13 = scmp.lt.s32.totalorder %s615_s26, %s611_s20 }
  0xf9   : > { %p613_p7 = pnand %p612_p6, %p750_p9 }
  0xfa   : > { %p618_p12 = por %p617_p13, %p616_p4 }
  0xfb   : > { %p614_p10 = pneg %p613_p7 }
  0xfd   : > { %p619_p8 = pnand %p618_p12, %p614_p10 }
  0xff   : > { %622 = shalt.err (!%p619_p8)
}
 0x100   : > { %506 = dma.vmem_to_hbm [thread:$0]  (%p750_p9), %s365_s4, 64, %s805_s7, %s347_s8  }
 0x101 PF: > { %s379_s28 = sand.u32 1, %s657_s9   ;;  %p856_p11 = scmp.ne.s32.totalorder %s854_s24, 0 }
 0x102   : > { %p857_p0 = scmp.ge.s32.totalorder %s677_s14, 2  ;;  %s380_s29 = scalar_lea.sflag [#allocation4], %s379_s28 }
 0x104   : > { %p513_p1 = pnand %p857_p0, %p856_p11 }
 0x106   : > { %p514_p2 = pneg %p513_p1 }
 0x108   : > { %652 = dma.done.wait (%p514_p2), %s380_s29, 64  }
 0x109   : > { %654 = vsyncadd (%p514_p2), %s380_s29, 4294967232  ;;  %s19_s14 = sadd.s32 1, %s677_s14   ;;  %s858_s9 = smov %s661_s10 }
 0x10a   : > { %p16_p3 = scmp.ge.s32.totalorder %s19_s14, 4   ;;  %s859_s10 = smov %s665_s11 }
 0x10b   : > { %s860_s11 = smov %s755_s23  ;;  %s861_s12 = smov %s673_s13 }
 0x10c   : > { %s862_s13 = smov %s864_s17  ;;  %18 = sbr.rel (!%p16_p3) target bundleno = 6 (0x6), region = 85 }
 0x111   :  { %392 = vsyncpa [#allocation3], 1 }
 0x112   :  { %394 = vsyncpa [#allocation3 + $0x1], 1 }
 0x113   :  { %395 = vsyncpa [#allocation4], 1 }
 0x114   :  { %397 = vsyncpa [#allocation4 + $0x1], 1 }

</bundles_post_ra>
